<compile_context>
chip_gen: v5e
topology: v5e:2x2
jax: 0.10.0
libtpu: 0.0.40
codegen_flags: <defaults>
</compile_context>

<pallas_src>
import functools

import jax
import jax.numpy as jnp
from jax import lax
from jax.experimental import pallas as pl
from jax.experimental.pallas import tpu as pltpu


def _round_up(x, m):
    return ((x + m - 1) // m) * m


def _padded_heads(C):
    """q/k channel count (C // 8) padded to a sublane (8) boundary."""
    return max(8, _round_up(C // 8, 8))


def _vmem_limit(nbytes):
    return int(min(max(nbytes, 32 * 1024 * 1024), 128 * 1024 * 1024))


# ---------------------------------------------------------------------------
# Kernel 1: fused q/k/v projection (convs + folded BN + ReLU), one image/step.
# ---------------------------------------------------------------------------
def _qkv_proj_kernel(x_ref, w_ref, b_ref, q_ref, k_ref, v_ref, *, W, C, C8p):
    """x_ref: (1, C, HW) f32; w_ref: (6*C8p+C, C) bf16 with BN scale folded in;
    b_ref: (6*C8p+C, 1) f32 per-row shift (center-tap / value rows only).
    Outputs: q (1, C8p, HW) bf16, k (1, HW, C8p) bf16, v (1, C, HW) bf16."""
    HW = x_ref.shape[2]
    x = x_ref[0].astype(jnp.bfloat16)                      # bf16 MXU operand

    # One lane-dense MXU matmul for all seven conv taps.
    prod = jnp.dot(w_ref[...], x, preferred_element_type=jnp.float32)
    prod = prod + b_ref[...]                               # (6*C8p + C, HW)

    ql = prod[0 * C8p:1 * C8p]     # tap for x[h, w-1]
    qc = prod[1 * C8p:2 * C8p]     # tap for x[h, w  ]
    qr = prod[2 * C8p:3 * C8p]     # tap for x[h, w+1]
    ku = prod[3 * C8p:4 * C8p]     # tap for x[h-1, w]
    kc = prod[4 * C8p:5 * C8p]     # tap for x[h,   w]
    kd = prod[5 * C8p:6 * C8p]     # tap for x[h+1, w]
    v = prod[6 * C8p:6 * C8p + C]                          # (C, HW)

    # Conv shifts applied AFTER the matmul (linearity): XLU lane rotates of
    # the small per-tap products + iota border masks (flat index i = h*W + w).
    pos = lax.broadcasted_iota(jnp.int32, (1, HW), 1)
    col = pos % W
    q = (qc
         + jnp.where(col != 0, pltpu.roll(ql, 1, axis=1), 0.0)
         + jnp.where(col != W - 1, pltpu.roll(qr, HW - 1, axis=1), 0.0))
    k = (kc
         + jnp.where(pos >= W, pltpu.roll(ku, W, axis=1), 0.0)
         + jnp.where(pos < HW - W, pltpu.roll(kd, HW - W, axis=1), 0.0))

    # Folded BatchNorm (inference) already lives in w/b; only the ReLU remains.
    q = jnp.maximum(q, 0.0)
    k = jnp.maximum(k, 0.0)

    q_ref[0] = q.astype(q_ref.dtype)           # (C8p, HW), lane-dense
    k_ref[0] = k.T.astype(k_ref.dtype)         # (HW, C8p): small f32 transpose
    v_ref[0] = v.astype(v_ref.dtype)           # (C, HW),  lane-dense


# ---------------------------------------------------------------------------
# Kernel 2: flash-style attention + gamma * weights + residual (channel-major).
# ---------------------------------------------------------------------------
def _flash_attn_kernel(x_ref, q_ref, k_ref, v_ref, gamma_ref, o_ref,
                       m_sc, l_sc, acc_sc, *, HW, TK, mask_kv):
    """Affinity tile s is (TK, TQ): keys on sublanes, queries on lanes, so both
    MXU matmuls are plain (M,K)@(K,N) and acc / out stay channel-major."""
    ki = pl.program_id(2)

    @pl.when(ki == 0)
    def _():
        m_sc[...] = jnp.full(m_sc.shape, -jnp.inf, dtype=m_sc.dtype)
        l_sc[...] = jnp.zeros(l_sc.shape, l_sc.dtype)
        acc_sc[...] = jnp.zeros(acc_sc.shape, acc_sc.dtype)

    q = q_ref[0]                   # (C8p, TQ) bf16
    k = k_ref[0]                   # (TK, C8p) bf16
    v = v_ref[0]                   # (C,  TK)  bf16

    # s[j, i] = <k_j, q_i> == affinity[i, j]; f32 accumulation on the MXU.
    s = jnp.dot(k, q, preferred_element_type=jnp.float32)        # (TK, TQ)

    if mask_kv:  # static: only emitted when HW % TK != 0 (ragged last kv tile)
        kv_row = ki * TK + lax.broadcasted_iota(jnp.int32, (TK, 1), 0)
        s = jnp.where(kv_row < HW, s, -jnp.inf)
        kv_col = ki * TK + lax.broadcasted_iota(jnp.int32, (1, TK), 1)
        v = jnp.where(kv_col < HW, v, jnp.zeros_like(v))

    m_prev = m_sc[...]                                            # (1, TQ)
    m_new = jnp.maximum(m_prev, jnp.max(s, axis=0, keepdims=True))
    alpha = jnp.exp(m_prev - m_new)
    p = jnp.exp(s - m_new)                                        # (TK, TQ) f32
    l_sc[...] = alpha * l_sc[...] + jnp.sum(p, axis=0, keepdims=True)
    acc_sc[...] = alpha * acc_sc[...] + jnp.dot(
        v, p.astype(jnp.bfloat16), preferred_element_type=jnp.float32)
    m_sc[...] = m_new

    @pl.when(ki == pl.num_programs(2) - 1)
    def _():
        # softmax normalization and gamma folded into one EUP reciprocal;
        # residual add stays f32.
        scale = gamma_ref[0] * pl.reciprocal(l_sc[...], approx=True)  # (1, TQ)
        o_ref[0] = (acc_sc[...] * scale + x_ref[0]).astype(o_ref.dtype)


# ---------------------------------------------------------------------------
# Wrapper
# ---------------------------------------------------------------------------
def spatial_attention_block(x_nchw, params):
    """x_nchw: (B, C, H, W) float32  ->  (B, C, H, W) float32."""
    B, C, H, W = x_nchw.shape
    HW = H * W
    C8p = _padded_heads(C)
    OutP = 6 * C8p + C

    # Channel-major activations: NCHW -> (B, C, HW) is a free reshape.
    x_flat = x_nchw.reshape(B, C, HW)

    # --- call 1: fused q/k/v projection (convs + folded BN + ReLU) ----------
    est1 = (2 * C * HW * 4 + 2 * OutP * C * 2
            + 2 * (2 * C8p + C) * HW * 2 + 6 * OutP * HW * 4)
    q, k, v = pl.pallas_call(
        functools.partial(_qkv_proj_kernel, W=W, C=C, C8p=C8p),
        out_shape=(jax.ShapeDtypeStruct((B, C8p, HW), jnp.bfloat16),
                   jax.ShapeDtypeStruct((B, HW, C8p), jnp.bfloat16),
                   jax.ShapeDtypeStruct((B, C, HW), jnp.bfloat16)),
        grid=(B,),
        in_specs=[
            pl.BlockSpec((1, C, HW), lambda b: (b, 0, 0)),      # x
            pl.BlockSpec((OutP, C), lambda b: (0, 0)),          # fused weights
            pl.BlockSpec((OutP, 1), lambda b: (0, 0)),          # fused shifts
        ],
        out_specs=(
            pl.BlockSpec((1, C8p, HW), lambda b: (b, 0, 0)),    # q
            pl.BlockSpec((1, HW, C8p), lambda b: (b, 0, 0)),    # k (row-major)
            pl.BlockSpec((1, C, HW), lambda b: (b, 0, 0)),      # v
        ),
        compiler_params=pltpu.CompilerParams(
            dimension_semantics=("parallel",),
            vmem_limit_bytes=_vmem_limit(est1)),
    )(x_flat, params["w_all"], params["bias"])

    # --- call 2: flash attention over grid (B, q_tiles, kv_tiles) -----------
    TQ = min(256, HW)   # queries per tile (lane axis of s / acc / out)
    TK = min(512, HW)   # keys per tile: TK > TQ amortizes the C8-poor qk^T
    nq = pl.cdiv(HW, TQ)
    nk = pl.cdiv(HW, TK)
    mask_kv = (HW % TK) != 0

    est2 = (2 * C * TQ * 4 + 2 * C8p * TQ * 2 + 2 * TK * C8p * 2
            + 2 * C * TK * 2 + 2 * C * TQ * 4
            + (C * TQ + 2 * TQ) * 4 + 6 * TK * TQ * 4)
    out_flat = pl.pallas_call(
        functools.partial(_flash_attn_kernel, HW=HW, TK=TK, mask_kv=mask_kv),
        out_shape=jax.ShapeDtypeStruct((B, C, HW), jnp.float32),
        grid=(B, nq, nk),
        in_specs=[
            pl.BlockSpec((1, C, TQ), lambda b, qi, ki: (b, 0, qi)),    # residual
            pl.BlockSpec((1, C8p, TQ), lambda b, qi, ki: (b, 0, qi)),  # q tile
            pl.BlockSpec((1, TK, C8p), lambda b, qi, ki: (b, ki, 0)),  # k tile
            pl.BlockSpec((1, C, TK), lambda b, qi, ki: (b, 0, ki)),    # v tile
            pl.BlockSpec(memory_space=pltpu.MemorySpace.SMEM),         # gamma
        ],
        out_specs=pl.BlockSpec((1, C, TQ), lambda b, qi, ki: (b, 0, qi)),
        scratch_shapes=[pltpu.VMEM((1, TQ), jnp.float32),   # running max
                        pltpu.VMEM((1, TQ), jnp.float32),   # running sum
                        pltpu.VMEM((C, TQ), jnp.float32)],  # output accumulator
        compiler_params=pltpu.CompilerParams(
            dimension_semantics=("parallel", "parallel", "arbitrary"),
            vmem_limit_bytes=_vmem_limit(est2)),
    )(x_flat, q, k, v, params["gamma"])

    return out_flat.reshape(B, C, H, W)


# ---------------------------------------------------------------------------
# Deterministic parameter construction (shapes per the PyTorch __init__).
# ---------------------------------------------------------------------------
def make_params(key, C):
    C8 = C // 8
    C8p = _padded_heads(C)
    eps = 1e-5
    ks = jax.random.split(key, 6)

    # Conv weights stored tap-major as (taps, C_in, C_out).
    wq = 0.2 * jax.random.normal(ks[0], (3, C, C8), jnp.float32)   # (1,3) conv
    wk = 0.2 * jax.random.normal(ks[1], (3, C, C8), jnp.float32)   # (3,1) conv
    wv = 0.2 * jax.random.normal(ks[2], (C, C), jnp.float32)       # 1x1 conv
    bq = 0.1 * jax.random.normal(ks[3], (C8,), jnp.float32)
    bk = 0.1 * jax.random.normal(ks[4], (C8,), jnp.float32)
    bv = 0.1 * jax.random.normal(ks[5], (C,), jnp.float32)

    # BatchNorm (inference-mode) parameters, deterministic.
    g_q = 1.0 + 0.1 * jnp.arange(C8, dtype=jnp.float32)
    b_q = 0.05 * jnp.arange(C8, dtype=jnp.float32)
    m_q = 0.01 * jnp.arange(C8, dtype=jnp.float32)
    v_q = 1.0 + 0.02 * jnp.arange(C8, dtype=jnp.float32)
    g_k = 1.0 - 0.05 * jnp.arange(C8, dtype=jnp.float32)
    b_k = -0.03 * jnp.arange(C8, dtype=jnp.float32)
    m_k = -0.01 * jnp.arange(C8, dtype=jnp.float32)
    v_k = 1.0 + 0.03 * jnp.arange(C8, dtype=jnp.float32)

    # Fold BN into scale/shift:  y = relu(conv(x) * s + t)
    sq = g_q / jnp.sqrt(v_q + eps)
    tq = (bq - m_q) * sq + b_q
    sk = g_k / jnp.sqrt(v_k + eps)
    tk = (bk - m_k) * sk + b_k

    def pad_rows(a, rows):                      # (C8, C) -> (rows, C)
        return jnp.pad(a, ((0, rows - a.shape[0]), (0, 0)))

    def pad_vec(a, n):
        return jnp.pad(a, (0, n - a.shape[0]))

    # Fused (out, in) weight: [wq_l|wq_c|wq_r|wk_u|wk_c|wk_d|wv] row slabs,
    # BN scale folded into the q/k slabs, each slab zero-padded to C8p rows.
    slabs = [pad_rows((wq[t] * sq[None, :]).T, C8p) for t in range(3)]
    slabs += [pad_rows((wk[t] * sk[None, :]).T, C8p) for t in range(3)]
    slabs.append(wv.T)
    w_all = jnp.concatenate(slabs, axis=0).astype(jnp.bfloat16)   # (6*C8p+C, C)

    zeros = jnp.zeros((C8p,), jnp.float32)
    bias = jnp.concatenate([
        zeros, pad_vec(tq, C8p), zeros,        # ql, qc, qr
        zeros, pad_vec(tk, C8p), zeros,        # ku, kc, kd
        bv,                                    # v
    ]).reshape(-1, 1)                                              # (6*C8p+C, 1)

    # gamma is initialized to 0 in the module; use a nonzero deterministic
    # value here so the attention path is actually exercised.
    gamma = 0.8

    params = dict(w_all=w_all, bias=bias,
                  gamma=jnp.full((1,), gamma, jnp.float32))
    raw = dict(wq=wq, wk=wk, wv=wv, bq=bq, bk=bk, bv=bv,
               sq=sq, tq=tq, sk=sk, tk=tk,
               g_q=g_q, b_q=b_q, m_q=m_q, v_q=v_q,
               g_k=g_k, b_k=b_k, m_k=m_k, v_k=v_k,
               eps=eps, gamma=gamma)
    return params, raw


# ---------------------------------------------------------------------------
# Pure-JAX reference matching the PyTorch forward (NCHW, lax.conv).  To mirror
# the kernel's MXU precision model, the projection convs use bf16-rounded
# activations / (BN-folded) weights with f32 accumulation, and the two big
# attention matmuls use bf16 operands.
# ---------------------------------------------------------------------------
def reference_forward(x, params, raw):
    B, C, H, W = x.shape
    C8 = C // 8
    HW = H * W

    def bf16_round(a):
        return a.astype(jnp.bfloat16).astype(jnp.float32)

    xb = bf16_round(x)

    # query conv (1,3), padding (0,1) + folded BN + ReLU
    wq_sc = raw["wq"] * raw["sq"][None, None, :]
    wq_pt = bf16_round(jnp.transpose(wq_sc, (2, 1, 0))[:, :, None, :])  # OIHW
    q = lax.conv_general_dilated(xb, wq_pt, (1, 1), ((0, 0), (1, 1)),
                                 dimension_numbers=("NCHW", "OIHW", "NCHW"))
    q = jnp.maximum(q + raw["tq"][None, :, None, None], 0.0)

    # key conv (3,1), padding (1,0) + folded BN + ReLU
    wk_sc = raw["wk"] * raw["sk"][None, None, :]
    wk_pt = bf16_round(jnp.transpose(wk_sc, (2, 1, 0))[:, :, :, None])  # OIHW
    k = lax.conv_general_dilated(xb, wk_pt, (1, 1), ((1, 1), (0, 0)),
                                 dimension_numbers=("NCHW", "OIHW", "NCHW"))
    k = jnp.maximum(k + raw["tk"][None, :, None, None], 0.0)

    # value conv 1x1
    wv_pt = bf16_round(raw["wv"].T[:, :, None, None])
    v = lax.conv_general_dilated(xb, wv_pt, (1, 1), ((0, 0), (0, 0)),
                                 dimension_numbers=("NCHW", "OIHW", "NCHW"))
    v = v + raw["bv"][None, :, None, None]

    qf = q.reshape(B, C8, HW).transpose(0, 2, 1).astype(jnp.bfloat16)   # (B,HW,C8)
    kf = k.reshape(B, C8, HW).astype(jnp.bfloat16)                      # (B,C8,HW)
    aff = jnp.matmul(qf, kf, preferred_element_type=jnp.float32)        # (B,HW,HW)
    aff = jax.nn.softmax(aff, axis=-1)
    vf = v.reshape(B, C, HW).astype(jnp.bfloat16)
    w = jnp.einsum("bcj,bij->bci", vf, aff.astype(jnp.bfloat16),
                   preferred_element_type=jnp.float32).reshape(B, C, H, W)
    return raw["gamma"] * w + x


# ---------------------------------------------------------------------------
if __name__ == "__main__":
    B, C, H, W = 2, 16, 16, 16          # in_channels must be >= 8 (C // 8 heads)
    key = jax.random.PRNGKey(0)
    kx, kp = jax.random.split(key)
    x = jax.random.normal(kx, (B, C, H, W), jnp.float32)

    params, raw = make_params(kp, C)

    out = jax.block_until_ready(spatial_attention_block(x, params))
    ref = jax.block_until_ready(reference_forward(x, params, raw))

    err = float(jnp.max(jnp.abs(out - ref)))
    # Tolerance covers bf16 MXU operands + approx reciprocal; structural bugs
    # (wrong tap/shift/mask/layout) produce O(0.1+) errors at these magnitudes.
    if not (err < 3e-2):
        raise AssertionError(f"Pallas kernel mismatch vs reference: max abs err {err}")

    print("KERNEL_OK")
</pallas_src>

<mosaic_0001>
module attributes {stable_mosaic.version = 11 : i64} {
  func.func @_qkv_proj_kernel(%arg0: i32, %arg1: memref<1x16x256xf32, #tpu.memory_space<vmem>>, %arg2: memref<64x16xbf16, #tpu.memory_space<vmem>>, %arg3: memref<64x1xf32, #tpu.memory_space<vmem>>, %arg4: memref<1x8x256xbf16, #tpu.memory_space<vmem>>, %arg5: memref<1x256x8xbf16, #tpu.memory_space<vmem>>, %arg6: memref<1x16x256xbf16, #tpu.memory_space<vmem>>) attributes {dimension_semantics = [#tpu.dimension_semantics<parallel>], iteration_bounds = array<i64: 2>, scalar_prefetch = 0 : i64, scratch_operands = 0 : i64, tpu.core_type = #tpu.core_type<tc>, window_params = [{transform_indices = @transform_0, window_bounds = array<i64: 1, 16, 256>}, {pipeline_mode = #tpu.pipeline_mode<synchronous>, transform_indices = @transform_1, window_bounds = array<i64: 64, 16>}, {pipeline_mode = #tpu.pipeline_mode<synchronous>, transform_indices = @transform_2, window_bounds = array<i64: 64, 1>}, {transform_indices = @transform_3, window_bounds = array<i64: 1, 8, 256>}, {transform_indices = @transform_4, window_bounds = array<i64: 1, 256, 8>}, {transform_indices = @transform_5, window_bounds = array<i64: 1, 16, 256>}]} {
    %c0 = arith.constant 0 : index
    %c0_0 = arith.constant 0 : index
    %c0_1 = arith.constant 0 : index
    %0 = vector.load %arg1[%c0, %c0_0, %c0_1] : memref<1x16x256xf32, #tpu.memory_space<vmem>>, vector<1x16x256xf32>
    %1 = vector.shape_cast %0 : vector<1x16x256xf32> to vector<16x256xf32>
    %2 = arith.truncf %1 : vector<16x256xf32> to vector<16x256xbf16>
    %c0_2 = arith.constant 0 : index
    %c0_3 = arith.constant 0 : index
    %3 = vector.load %arg2[%c0_2, %c0_3] : memref<64x16xbf16, #tpu.memory_space<vmem>>, vector<64x16xbf16>
    %cst = arith.constant dense<0.000000e+00> : vector<64x256xf32>
    %4 = tpu.matmul %3, %2, %cst {dimension_numbers = #tpu.dot_dimension_numbers<[1], [0], [0], [1], [0, 0, 1, 1], [], []>} : vector<64x16xbf16>, vector<16x256xbf16>, vector<64x256xf32> -> vector<64x256xf32>
    %c0_4 = arith.constant 0 : index
    %c0_5 = arith.constant 0 : index
    %5 = vector.load %arg3[%c0_4, %c0_5] : memref<64x1xf32, #tpu.memory_space<vmem>>, vector<64x1xf32>
    %6 = vector.broadcast %5 : vector<64x1xf32> to vector<64x256xf32>
    %7 = arith.addf %4, %6 : vector<64x256xf32>
    %8 = vector.extract_strided_slice %7 {offsets = [0, 0], sizes = [8, 256], strides = [1, 1]} : vector<64x256xf32> to vector<8x256xf32>
    %9 = vector.extract_strided_slice %7 {offsets = [8, 0], sizes = [8, 256], strides = [1, 1]} : vector<64x256xf32> to vector<8x256xf32>
    %10 = vector.extract_strided_slice %7 {offsets = [16, 0], sizes = [8, 256], strides = [1, 1]} : vector<64x256xf32> to vector<8x256xf32>
    %11 = vector.extract_strided_slice %7 {offsets = [24, 0], sizes = [8, 256], strides = [1, 1]} : vector<64x256xf32> to vector<8x256xf32>
    %12 = vector.extract_strided_slice %7 {offsets = [32, 0], sizes = [8, 256], strides = [1, 1]} : vector<64x256xf32> to vector<8x256xf32>
    %13 = vector.extract_strided_slice %7 {offsets = [40, 0], sizes = [8, 256], strides = [1, 1]} : vector<64x256xf32> to vector<8x256xf32>
    %14 = vector.extract_strided_slice %7 {offsets = [48, 0], sizes = [16, 256], strides = [1, 1]} : vector<64x256xf32> to vector<16x256xf32>
    %15 = tpu.iota {dimensions = array<i32: 1>} : vector<1x256xi32>
    %c16_i32 = arith.constant 16 : i32
    %c0_i32 = arith.constant 0 : i32
    %16 = arith.cmpi eq, %c16_i32, %c0_i32 : i32
    %c1_i32 = arith.constant 1 : i32
    %17 = arith.select %16, %c1_i32, %c16_i32 : i32
    %18 = vector.broadcast %17 : i32 to vector<1x256xi32>
    %19 = arith.remsi %15, %18 : vector<1x256xi32>
    %c0_i32_6 = arith.constant 0 : i32
    %20 = vector.broadcast %c0_i32_6 : i32 to vector<1x256xi32>
    %21 = arith.cmpi ne, %19, %20 : vector<1x256xi32>
    %c0_i32_7 = arith.constant 0 : i32
    %22 = vector.broadcast %c0_i32_7 : i32 to vector<1x256xi32>
    %23 = arith.cmpi slt, %19, %22 : vector<1x256xi32>
    %c0_i32_8 = arith.constant 0 : i32
    %24 = arith.cmpi slt, %17, %c0_i32_8 : i32
    %25 = vector.broadcast %24 : i1 to vector<1x256xi1>
    %26 = vector.broadcast %25 : vector<1x256xi1> to vector<1x256xi1>
    %27 = arith.xori %23, %26 : vector<1x256xi1>
    %28 = arith.andi %27, %21 : vector<1x256xi1>
    %29 = vector.broadcast %17 : i32 to vector<1x256xi32>
    %30 = arith.addi %19, %29 : vector<1x256xi32>
    %31 = arith.select %28, %30, %19 : vector<1x256xi1>, vector<1x256xi32>
    %c0_i32_9 = arith.constant 0 : i32
    %32 = vector.broadcast %c0_i32_9 : i32 to vector<1x256xi32>
    %33 = arith.cmpi ne, %31, %32 : vector<1x256xi32>
    %c1_i32_10 = arith.constant 1 : i32
    %34 = tpu.dynamic_rotate %8 by %c1_i32_10 dim 1 : vector<8x256xf32>, i32 -> vector<8x256xf32>
    %cst_11 = arith.constant 0.000000e+00 : f32
    %35 = vector.shape_cast %33 : vector<1x256xi1> to vector<1x256xi1>
    %36 = vector.broadcast %35 : vector<1x256xi1> to vector<8x256xi1>
    %37 = vector.broadcast %cst_11 : f32 to vector<8x256xf32>
    %38 = arith.select %36, %34, %37 : vector<8x256xi1>, vector<8x256xf32>
    %39 = arith.addf %9, %38 : vector<8x256xf32>
    %c15_i32 = arith.constant 15 : i32
    %40 = vector.broadcast %c15_i32 : i32 to vector<1x256xi32>
    %41 = arith.cmpi ne, %31, %40 : vector<1x256xi32>
    %c255_i32 = arith.constant 255 : i32
    %42 = tpu.dynamic_rotate %10 by %c255_i32 dim 1 : vector<8x256xf32>, i32 -> vector<8x256xf32>
    %cst_12 = arith.constant 0.000000e+00 : f32
    %43 = vector.shape_cast %41 : vector<1x256xi1> to vector<1x256xi1>
    %44 = vector.broadcast %43 : vector<1x256xi1> to vector<8x256xi1>
    %45 = vector.broadcast %cst_12 : f32 to vector<8x256xf32>
    %46 = arith.select %44, %42, %45 : vector<8x256xi1>, vector<8x256xf32>
    %47 = arith.addf %39, %46 : vector<8x256xf32>
    %c16_i32_13 = arith.constant 16 : i32
    %48 = vector.broadcast %c16_i32_13 : i32 to vector<1x256xi32>
    %49 = arith.cmpi sge, %15, %48 : vector<1x256xi32>
    %c16_i32_14 = arith.constant 16 : i32
    %50 = tpu.dynamic_rotate %11 by %c16_i32_14 dim 1 : vector<8x256xf32>, i32 -> vector<8x256xf32>
    %cst_15 = arith.constant 0.000000e+00 : f32
    %51 = vector.shape_cast %49 : vector<1x256xi1> to vector<1x256xi1>
    %52 = vector.broadcast %51 : vector<1x256xi1> to vector<8x256xi1>
    %53 = vector.broadcast %cst_15 : f32 to vector<8x256xf32>
    %54 = arith.select %52, %50, %53 : vector<8x256xi1>, vector<8x256xf32>
    %55 = arith.addf %12, %54 : vector<8x256xf32>
    %c240_i32 = arith.constant 240 : i32
    %56 = vector.broadcast %c240_i32 : i32 to vector<1x256xi32>
    %57 = arith.cmpi slt, %15, %56 : vector<1x256xi32>
    %c240_i32_16 = arith.constant 240 : i32
    %58 = tpu.dynamic_rotate %13 by %c240_i32_16 dim 1 : vector<8x256xf32>, i32 -> vector<8x256xf32>
    %cst_17 = arith.constant 0.000000e+00 : f32
    %59 = vector.shape_cast %57 : vector<1x256xi1> to vector<1x256xi1>
    %60 = vector.broadcast %59 : vector<1x256xi1> to vector<8x256xi1>
    %61 = vector.broadcast %cst_17 : f32 to vector<8x256xf32>
    %62 = arith.select %60, %58, %61 : vector<8x256xi1>, vector<8x256xf32>
    %63 = arith.addf %55, %62 : vector<8x256xf32>
    %cst_18 = arith.constant 0.000000e+00 : f32
    %64 = vector.broadcast %cst_18 : f32 to vector<8x256xf32>
    %65 = arith.maximumf %47, %64 : vector<8x256xf32>
    %cst_19 = arith.constant 0.000000e+00 : f32
    %66 = vector.broadcast %cst_19 : f32 to vector<8x256xf32>
    %67 = arith.maximumf %63, %66 : vector<8x256xf32>
    %68 = arith.truncf %65 : vector<8x256xf32> to vector<8x256xbf16>
    %c0_20 = arith.constant 0 : index
    %c0_21 = arith.constant 0 : index
    %c0_22 = arith.constant 0 : index
    %69 = vector.load %arg4[%c0_20, %c0_21, %c0_22] : memref<1x8x256xbf16, #tpu.memory_space<vmem>>, vector<1x8x256xbf16>
    %70 = vector.shape_cast %69 : vector<1x8x256xbf16> to vector<8x256xbf16>
    %71 = vector.shape_cast %68 : vector<8x256xbf16> to vector<1x8x256xbf16>
    tpu.vector_store %arg4[%c0_20, %c0_21, %c0_22], %71 {strides = array<i32>} : memref<1x8x256xbf16, #tpu.memory_space<vmem>>, vector<1x8x256xbf16>,
    %72 = tpu.transpose %67, [1, 0] : vector<8x256xf32> -> vector<256x8xf32>
    %73 = arith.truncf %72 : vector<256x8xf32> to vector<256x8xbf16>
    %c0_23 = arith.constant 0 : index
    %c0_24 = arith.constant 0 : index
    %c0_25 = arith.constant 0 : index
    %74 = vector.load %arg5[%c0_23, %c0_24, %c0_25] : memref<1x256x8xbf16, #tpu.memory_space<vmem>>, vector<1x256x8xbf16>
    %75 = vector.shape_cast %74 : vector<1x256x8xbf16> to vector<256x8xbf16>
    %76 = vector.shape_cast %73 : vector<256x8xbf16> to vector<1x256x8xbf16>
    tpu.vector_store %arg5[%c0_23, %c0_24, %c0_25], %76 {strides = array<i32>} : memref<1x256x8xbf16, #tpu.memory_space<vmem>>, vector<1x256x8xbf16>,
    %77 = arith.truncf %14 : vector<16x256xf32> to vector<16x256xbf16>
    %c0_26 = arith.constant 0 : index
    %c0_27 = arith.constant 0 : index
    %c0_28 = arith.constant 0 : index
    %78 = vector.load %arg6[%c0_26, %c0_27, %c0_28] : memref<1x16x256xbf16, #tpu.memory_space<vmem>>, vector<1x16x256xbf16>
    %79 = vector.shape_cast %78 : vector<1x16x256xbf16> to vector<16x256xbf16>
    %80 = vector.shape_cast %77 : vector<16x256xbf16> to vector<1x16x256xbf16>
    tpu.vector_store %arg6[%c0_26, %c0_27, %c0_28], %80 {strides = array<i32>} : memref<1x16x256xbf16, #tpu.memory_space<vmem>>, vector<1x16x256xbf16>,
    return
  }
  func.func @transform_0(%arg0: i32) -> (i32, i32, i32) {
    %c0_i32 = arith.constant 0 : i32
    %c0_i32_0 = arith.constant 0 : i32
    %c0_i32_1 = arith.constant 0 : i32
    return %arg0, %c0_i32, %c0_i32_0 : i32, i32, i32
  }
  func.func @transform_1(%arg0: i32) -> (i32, i32) {
    %c0_i32 = arith.constant 0 : i32
    %c0_i32_0 = arith.constant 0 : i32
    %c0_i32_1 = arith.constant 0 : i32
    return %c0_i32, %c0_i32_0 : i32, i32
  }
  func.func @transform_2(%arg0: i32) -> (i32, i32) {
    %c0_i32 = arith.constant 0 : i32
    %c0_i32_0 = arith.constant 0 : i32
    %c0_i32_1 = arith.constant 0 : i32
    return %c0_i32, %c0_i32_0 : i32, i32
  }
  func.func @transform_3(%arg0: i32) -> (i32, i32, i32) {
    %c0_i32 = arith.constant 0 : i32
    %c0_i32_0 = arith.constant 0 : i32
    %c0_i32_1 = arith.constant 0 : i32
    return %arg0, %c0_i32, %c0_i32_0 : i32, i32, i32
  }
  func.func @transform_4(%arg0: i32) -> (i32, i32, i32) {
    %c0_i32 = arith.constant 0 : i32
    %c0_i32_0 = arith.constant 0 : i32
    %c0_i32_1 = arith.constant 0 : i32
    return %arg0, %c0_i32, %c0_i32_0 : i32, i32, i32
  }
  func.func @transform_5(%arg0: i32) -> (i32, i32, i32) {
    %c0_i32 = arith.constant 0 : i32
    %c0_i32_0 = arith.constant 0 : i32
    %c0_i32_1 = arith.constant 0 : i32
    return %arg0, %c0_i32, %c0_i32_0 : i32, i32, i32
  }
}

</mosaic_0001>

<bundles_post_ra>
// kernel: tpu_custom_call.1
= control target key start
LH: loop header
LB: loop body
LE: loop exit
PB: predicated region body
PF: predicated region fallthrough
CT: control target
= control target key end

     0   :  { %s1357_s0 = inlined_call_operand.vmem [shape: f32[2,16,256], index: 0, kind: input, shape index: {}]   ;;  %s1358_s1 = inlined_call_operand.vmem [shape: bf16[64,16], index: 1, kind: input, shape index: {}]   ;;  %s1359_s2 = inlined_call_operand.vmem [shape: f32[64,1], index: 2, kind: input, shape index: {}]   ;;  %s1360_s3 = inlined_call_operand.hbm [shape: bf16[2,8,256], index: 3, kind: output, shape index: {0}]   ;;  %s1361_s4 = inlined_call_operand.vmem [shape: bf16[2,256,8], index: 4, kind: output, shape index: {1}]   ;;  %s1362_s5 = inlined_call_operand.hbm [shape: bf16[2,16,256], index: 5, kind: output, shape index: {2}]  }
   0x1   :  { %1363 = sst [smem:[#allocation8_spill]] %s1357_s0 }
   0x2   :  { %1364 = sst [smem:[#allocation9_spill]] %s1358_s1 }
   0x3   :  { %11 = vsyncpa [#allocation3], 0 }
   0x4   :  { %13 = vsyncpa [#allocation3 + $0x1], 0 }
   0x5   :  { %14 = vsyncpa [#allocation5], 0 }
   0x6   :  { %16 = vsyncpa [#allocation5 + $0x1], 0  ;;  %s1120_s18 = smov 0   ;;  %s1122_s19 = smov 0  }
   0x7   :  { %s1124_s20 = smov 0   ;;  %s1126_s21 = smov 0  }
   0x8 LB: > { %s1141_s22 = sadd.s32 4294967295, %s1081_s21   ;;  %s798_s23 = sadd.s32 4294967294, %s1081_s21   ;;  %s1081_s21 = sphi %s1126_s21, %s1372_s21   ;;  %s1077_s20 = sphi %s1124_s20, %s1371_s20   ;;  %s1073_s19 = sphi %s1122_s19, %s1370_s19   ;;  %s1069_s18 = sphi %s1120_s18, %s1369_s18  }
   0x9   : > { %s1145_s24 = sadd.s32 1, %s1081_s21   ;;  %s97_s25 = sadd.s32 1, %s1077_s20 }
   0xa   : > { %s94_s26 = ssub.s32 %s1081_s21, %s1145_s24  ;;  %p107_p0 = scmp.ne.s32.totalorder %s1077_s20, %s1073_s19 }
   0xb   : > { %p95_p1 = scmp.eq.s32.totalorder %s94_s26, 0  ;;  %p108_p2 = scmp.eq.s32.totalorder %s1141_s22, 1 }
   0xc   : > { %p113_p3 = scmp.ne.s32.totalorder %s1073_s19, %s1069_s18  ;;  %p114_p4 = scmp.eq.s32.totalorder %s798_s23, 1 }
   0xd   : > { %s1156_s27 = scalar_select %p95_p1, %s1077_s20, %s97_s25  }
   0xe   : > { %p1158_p5 = por %p108_p2, %p107_p0  ;;  %p1162_p6 = por %p114_p4, %p113_p3 }
   0xf   : > { %p801_p7 = scmp.ge.s32.totalorder %s1081_s21, 1  ;;  %p198_p8 = scmp.lt.s32.totalorder %s1081_s21, 3 }
  0x11   : > { %p199_p9 = pnand %p801_p7, %p198_p8 }
  0x12   : > { %p236_p10 = scmp.lt.s32.totalorder (!%p199_p9), %s1141_s22, 1  ;;  %s1367_s0 = sld [smem:[#allocation8_spill]] (!%p199_p9) }
  0x13   : > { %202 = sbr.rel (%p199_p9) target bundleno = 581 (0x245), region = 32  ;;  %s1368_s1 = sld [smem:[#allocation9_spill]] (!%p199_p9) }
  0x14   : > { %s1084_s11 = smov (!%p199_p9), 112   ;;  %s1085_s16 = smov (!%p199_p9), 16  }
  0x15   : > { %s1086_s17 = smov (!%p199_p9), 1   ;;  %s1223_s6 = sand.u32 (!%p199_p9), 1, %s1073_s19  }
  0x16   : > { %s803_s7 = sshll.u32 (!%p199_p9), %s1223_s6, 4  ;;  %s1087_s8 = smov (!%p199_p9), 127  }
  0x17   : > { %s846_s23 = sshll.u32 (!%p199_p9), %s1141_s22, 3  ;;  %s847_s25 = sshll.u32 (!%p199_p9), %s1141_s22, 4 }
  0x18   : > { %v264_v0 = vld [vmem:[%s1359_s2 + $0x18] sm:$0xff]  ;;  %v1083_v1 = vmov 0   ;;  %v261_v2 = vld [vmem:[%s1359_s2] sm:$0xff]  ;;  %s1176_s9 = scalar_select %p236_p10, %s1141_s22, 1  ;;  %v266_v11 = vld [vmem:[%s1359_s2 + $0x28] sm:$0xff]  ;;  %vm329_vm0 = vcmask 130048   ;;  %v400_v40 = vlaneseq }
  0x19   : > { %903 = vset.pattern.permute.xlu1 %v1083_v1  ;;  %902 = vset.pattern.permute.xlu0 %v1083_v1  ;;  %v842_v8 = vld [vmem:[%s1368_s1] sm:$0xff]  ;;  %v844_v10 = vld [vmem:[%s1368_s1 + $0x10] sm:$0xff]  ;;  %v843_v13 = vld [vmem:[%s1368_s1 + $0x8] sm:$0xff]  ;;  %s635_s15 = scalar_lea.sflag [#allocation3], %s1223_s6 }
  0x1a   : > { %286 = vperm.xlu0 %902, %v264_v0   ;;  %271 = vperm.xlu1 %903, %v261_v2   ;;  %s840_s10 = sshll.u32 %s1176_s9, 5  ;;  %v265_v12 = vld [vmem:[%s1359_s2 + $0x20] sm:$0xff]  ;;  %v845_v14 = vld [vmem:[%s1368_s1 + $0x18] sm:$0xff]  ;;  %v263_v29 = vld [vmem:[%s1359_s2 + $0x10] sm:$0xff]  ;;  %v1216_v42 = vand.u32 127, %v400_v40 }
  0x1b   : > { %904 = vset.pattern.permute.xlu2 %v1083_v1  ;;  %s240_s13 = scalar_lea.vmem %s1367_s0, %s840_s10  ;;  %v267_v30 = vld [vmem:[%s1359_s2 + $0x30] sm:$0xff]  ;;  %v262_v38 = vld [vmem:[%s1359_s2 + $0x8] sm:$0xff]  ;;  %v268_v39 = vld [vmem:[%s1359_s2 + $0x38] sm:$0xff]  ;;  %s1226_s10 = scalar_lea.vmem [#allocation4], %s803_s7 }
  0x1c   : > { %v247_v3 = vld [vmem:[%s240_s13] sm:$0xff]  ;;  %v249_v4 = vld [vmem:[%s240_s13 + $0x10] sm:$0xff]  ;;  %v248_v5 = vld [vmem:[%s240_s13 + $0x8] sm:$0xff]  ;;  %vm467_vm1 = vcmp.lt.s32.totalorder %v1216_v42, 16  ;;  %vm461_vm2 = vcmp.ge.s32.totalorder %v1216_v42, 16  ;;  %v402_v46 = vadd.s32 128, %v1216_v42  ;;  %s656_s7 = scalar_lea.hbm %s1360_s3, %s846_s23 }
  0x1d   : > { %v251_v6 = vpack.c.bf16 %v249_v4, %v247_v3  ;;  %v250_v7 = vld [vmem:[%s240_s13 + $0x18] sm:$0xff]  ;;  %vm484_vm3 = vcmp.lt.s32.totalorder %v1216_v42, 112  ;;  %vm433_vm5 = vcmp.lt.s32.totalorder %v1216_v42, 1  ;;  %vm450_vm8 = vcmp.lt.s32.totalorder %v1216_v42, 127  ;;  %s841_s13 = sshll.u32 %s1176_s9, 7  ;;  %s675_s14 = sshll.u32 %s1226_s10, 4  ;;  %s1243_s14 = int_to_ptr.vmem [resolvable:$true] %s675_s14 }
  0x1e   : > { %v252_v9 = vpack.c.bf16 %v250_v7, %v248_v5  ;;  %vm479_vm4 = vcmp.lt.s32.totalorder %v402_v46, 240  ;;  %s1007_s23 = scalar_lea.hbm %s1360_s3, 16 }
  0x1f   : > { %349 = vmatpush.bf16.msra.mxu0 %v251_v6  ;;  %848 = vmatpush.bf16.msra.mxu2 %v251_v6 }
  0x20   : > { %378 = vmatpush.bf16.msra.mxu1 %v252_v9  ;;  %849 = vmatpush.bf16.msra.mxu3 %v252_v9 }
  0x22   : > { %296 = vperm.xlu0 %902, %v266_v11   ;;  %291 = vperm.xlu1 %903, %v265_v12  }
  0x23   : > { %824 = vmatmul.msk.bf16.vlgmr.msra.gmra.mxu0 %vm329_vm0, %v842_v8  ;;  %826 = vmatmul.msk.bf16.vlgmr.msra.gmra.mxu2 %vm329_vm0, %v844_v10 }
  0x24   : > { %828 = vmatmul.msk.bf16.vlgmr.msra.gmra.mxu1 %vm329_vm0, %v842_v8  ;;  %830 = vmatmul.msk.bf16.vlgmr.msra.gmra.mxu3 %vm329_vm0, %v844_v10 }
  0x33   : > { %825 = vmatmul.msk.bf16.gmra.mxu0 %vm329_vm0, %v843_v13  ;;  %827 = vmatmul.msk.bf16.gmra.mxu2 %vm329_vm0, %v845_v14 }
  0x34   : > { %829 = vmatmul.msk.bf16.gmra.mxu1 %vm329_vm0, %v843_v13  ;;  %831 = vmatmul.msk.bf16.gmra.mxu3 %vm329_vm0, %v845_v14  ;;  %v414_v14 = vand.u32 15, %v402_v46 }
  0x36   : > { %vm428_vm6 = vcmp.ne.s32.totalorder %v414_v14, 0  ;;  %vm445_vm10 = vcmp.ne.s32.totalorder %v414_v14, 15 }
  0x8c   : > { %v287_v17 = vpop.permute.xlu0 %286  ;;  %v272_v33 = vpop.permute.xlu1 %271 }
  0x94   : > { %v297_v22 = vpop.permute.xlu0 %296  ;;  %v292_v43 = vpop.permute.xlu1 %291 }
  0xa0   : > { %v351_v15 = vpop.f32.mrf.mxu0 }
  0xa1   : > { %v380_v16 = vpop.f32.mrf.mxu1  ;;  %v352_v35 = vadd.f32 %v351_v15, %v272_v33 }
  0xa2   : > { %v381_v36 = vadd.f32 %v380_v16, %v272_v33 }
  0xa6   : > { %v361_v18 = vpop.f32.mrf.mxu2 }
  0xa7   : > { %v390_v19 = vpop.f32.mrf.mxu3  ;;  %v362_v48 = vadd.f32 %v361_v18, %v292_v43 }
  0xa8   : > { %v1200_v20 = vpop.f32.mrf.mxu0  ;;  %v391_v51 = vadd.f32 %v390_v19, %v292_v43 }
  0xa9   : > { %v1202_v21 = vpop.f32.mrf.mxu1 }
  0xae   : > { %v363_v23 = vpop.f32.mrf.mxu2 }
  0xaf   : > { %v364_v24 = vadd.f32 %v363_v23, %v297_v22  ;;  %v392_v25 = vpop.f32.mrf.mxu3 }
  0xb0   : > { %v393_v26 = vadd.f32 %v392_v25, %v297_v22  ;;  %v356_v27 = vpop.f32.mrf.mxu0 }
  0xb1   : > { %480 = vrot.lane.b32.xlu0 %v364_v24, %s1084_s11  ;;  %v385_v28 = vpop.f32.mrf.mxu1  ;;  %v407_v24 = vand.u32 15, %v1216_v42 }
  0xb2   : > { %482 = vrot.lane.b32.xlu1 %v393_v26, %s1084_s11  ;;  %s802_s11 = sshll.u32 %s1223_s6, 3 }
  0xb3   : > { %vm427_vm7 = vcmp.ne.s32.totalorder %v407_v24, 0  ;;  %vm444_vm9 = vcmp.ne.s32.totalorder %v407_v24, 15  ;;  %s221_s12 = scalar_lea.vmem [#allocation2], %s802_s11  ;;  %s674_s11 = scalar_lea.hbm %s1362_s5, %s847_s25 }
  0xb4   : > { %s658_s9 = sshll.u32 %s221_s12, 4  ;;  %s659_s9 = int_to_ptr.vmem [resolvable:$true] %s658_s9 }
  0xb6   : > { %v366_v50 = vpop.f32.mrf.mxu2 }
  0xb7   : > { %v395_v53 = vpop.f32.mrf.mxu3 }
  0xb8   : > { %v358_v31 = vpop.f32.mrf.mxu0 }
  0xb9   : > { %v359_v32 = vadd.f32 %v358_v31, %v287_v17  ;;  %281 = vperm.xlu0 %902, %v263_v29   ;;  %v387_v34 = vpop.f32.mrf.mxu1 }
  0xba   : > { %301 = vperm.xlu1 %903, %v267_v30   ;;  %v388_v37 = vadd.f32 %v387_v34, %v287_v17 }
  0xbb   : > { %463 = vrot.lane.b32.xlu2 %v359_v32, %s1085_s16 }
  0xbe   : > { %v368_v1 = vpop.f32.mrf.mxu2 }
  0xbf   : > { %v397_v4 = vpop.f32.mrf.mxu3 }
  0xc1   : > { %429 = vrot.lane.b32.xlu0 %v352_v35, %s1086_s17 }
  0xc2   : > { %431 = vrot.lane.b32.xlu1 %v381_v36, %s1086_s17  ;;  %s1241_s17 = scalar_lea.vmem %s1361_s4, %s841_s13 }
  0xc3   : > { %465 = vrot.lane.b32.xlu2 %v388_v37, %s1085_s16 }
  0xcb   : > { %276 = vperm.xlu2 %904, %v262_v38  }
  0xd3   : > { %306 = vperm.xlu2 %904, %v268_v39  }
 0x115   : > { %v464_v41 = vpop.permute.xlu2 %463 }
 0x11d   : > { %v466_v44 = vpop.permute.xlu2 %465 }
 0x11e   : > { %v469_v45 = vsel %vm467_vm1, %v466_v44, %v464_v41  ;;  %v468_v49 = vsel %vm467_vm1, %v464_v41, %v466_v44 }
 0x11f   : > { %v474_v47 = vsel %vm461_vm2, %v469_v45, 0.0  ;;  %v477_v56 = vadd.f32 %v468_v49, %v391_v51 }
 0x120   : > { %v476_v54 = vadd.f32 %v474_v47, %v362_v48 }
 0x123   : > { %v481_v52 = vpop.permute.xlu0 %480 }
 0x124   : > { %v483_v55 = vpop.permute.xlu1 %482 }
 0x125   : > { %v485_v57 = vsel %vm484_vm3, %v481_v52, %v483_v55  ;;  %v486_v58 = vsel %vm484_vm3, %v483_v55, %v481_v52  ;;  %v277_v59 = vpop.permute.xlu2 %276 }
 0x126   : > { %v492_v60 = vsel %vm479_vm4, %v486_v58, 0.0  ;;  %v493_v61 = vadd.f32 %v485_v57, %v476_v54  ;;  %v383_v18 = vadd.f32 %v1202_v21, %v277_v59 }
 0x127   : > { %v494_v62 = vadd.f32 %v492_v60, %v477_v56 }
 0x128   : > { %v497_v63 = vmax.f32 %v493_v61, 0.0 }
 0x129   : > { %v498_v0 = vmax.f32 %v494_v62, 0.0 }
 0x12b   : > { %v282_v2 = vpop.permute.xlu0 %281  ;;  %v905_v3 = vpack.i.bf16 %v498_v0, %v497_v63 }
 0x12c   : > { %v302_v5 = vpop.permute.xlu1 %301  ;;  %v357_v6 = vadd.f32 %v356_v27, %v282_v2  ;;  %v386_v7 = vadd.f32 %v385_v28, %v282_v2  ;;  %v354_v27 = vadd.f32 %v1200_v20, %v277_v59 }
 0x12d   : > { %v396_v8 = vadd.f32 %v395_v53, %v302_v5  ;;  %v367_v9 = vadd.f32 %v366_v50, %v302_v5  ;;  %906 = vxpose.xlu2.b32.start.end [1/1] (short) %v905_v3, 128  ;;  %v307_v10 = vpop.permute.xlu2 %306 }
 0x12e   : > { %448 = vrot.lane.b32.xlu1 %v386_v7, %s1087_s8  ;;  %446 = vrot.lane.b32.xlu0 %v357_v6, %s1087_s8  ;;  %v369_v11 = vadd.f32 %v368_v1, %v307_v10  ;;  %v398_v12 = vadd.f32 %v397_v4, %v307_v10 }
 0x12f   : > { %v630_v13 = vpack.c.bf16 %v396_v8, %v367_v9 }
 0x130   : > { %v631_v15 = vpack.c.bf16 %v398_v12, %v369_v11 }
 0x131   : > { %632 = vst [vmem:[%s1226_s10] sm:$0xff] %v630_v13 }
 0x132   : > { %633 = vst [vmem:[%s1226_s10 + $0x8] sm:$0xff] %v631_v15  ;;  %s660_s10 = sshll.u32 %s656_s7, 4  ;;  %s661_s10 = int_to_ptr.hbm [resolvable:$true] %s660_s10 }
 0x133   : > { %v430_v16 = vpop.permute.xlu0 %429  ;;  %s1001_s16 = sshra.s32 %s661_s10, 4  ;;  %s1002_s16 = int_to_ptr.hbm [resolvable:$true] %s1001_s16 }
 0x134   : > { %v432_v17 = vpop.permute.xlu1 %431  ;;  %s1003_s13 = scalar_lea.hbm %s1002_s16, 8  ;;  %p1008_p0 = scmp.lt.s32.totalorder %s1002_s16, %s1360_s3 }
 0x135   : > { %v434_v19 = vsel %vm433_vm5, %v430_v16, %v432_v17  ;;  %v435_v25 = vsel %vm433_vm5, %v432_v17, %v430_v16  ;;  %p1004_p11 = scmp.ne.s32.totalorder %s1002_s16, %s1003_s13  ;;  %p1009_p1 = scmp.lt.s32.totalorder %s1007_s23, %s1003_s13 }
 0x136   : > { %v441_v22 = vsel %vm428_vm6, %v434_v19, 0.0  ;;  %v440_v26 = vsel %vm427_vm7, %v435_v25, 0.0 }
 0x137   : > { %v443_v23 = vadd.f32 %v441_v22, %v383_v18  ;;  %v442_v21 = vadd.f32 %v440_v26, %v354_v27  ;;  %p1005_p12 = pnand %p1004_p11, %p1158_p5  ;;  %p1010_p2 = por %p1009_p1, %p1008_p0 }
 0x139   : > { %p1006_p13 = pneg %p1005_p12 }
 0x13b   : > { %p1011_p3 = pnand %p1010_p2, %p1006_p13 }
 0x1a0   : > { %v449_v28 = vpop.permute.xlu1 %448  ;;  %v447_v29 = vpop.permute.xlu0 %446 }
 0x1a1   : > { %v451_v30 = vsel %vm450_vm8, %v447_v29, %v449_v28  ;;  %v452_v31 = vsel %vm450_vm8, %v449_v28, %v447_v29 }
 0x1a2   : > { %v457_v32 = vsel %vm444_vm9, %v451_v30, 0.0  ;;  %v458_v33 = vsel %vm445_vm10, %v452_v31, 0.0 }
 0x1a3   : > { %v459_v34 = vadd.f32 %v457_v32, %v442_v21  ;;  %v460_v35 = vadd.f32 %v458_v33, %v443_v23 }
 0x1a5   : > { %v495_v36 = vmax.f32 %v459_v34, 0.0  ;;  %v496_v37 = vmax.f32 %v460_v35, 0.0 }
 0x1a7   : > { %v499_v20 = vpack.c.bf16 %v496_v37, %v495_v36 }
 0x1a9   : > { %500 = vst [vmem:[%s221_s12] sm:$0xff] %v499_v20 }
 0x1aa   : > { %1014 = shalt.err (!%p1011_p3)
}
 0x1ab   : > { %850 = dma.vmem_to_hbm [thread:$0]  (%p1158_p5), %s659_s9, 128, %s661_s10, %s635_s15   ;;  %vm597_vm11 = vcmask 60416  }
 0x1ac   : > { %s677_s0 = sshll.u32 %s674_s11, 4  ;;  %s645_s1 = scalar_lea.sflag [#allocation5], %s1223_s6  ;;  %s678_s0 = int_to_ptr.hbm [resolvable:$true] %s677_s0 }
 0x1ad   : > { %s1029_s12 = sshra.s32 %s678_s0, 4  ;;  %s1035_s16 = scalar_lea.hbm %s1362_s5, 32  ;;  %s1030_s12 = int_to_ptr.hbm [resolvable:$true] %s1029_s12 }
 0x1ae   : > { %s1031_s25 = scalar_lea.hbm %s1030_s12, 16  ;;  %p1036_p9 = scmp.lt.s32.totalorder %s1030_s12, %s1362_s5 }
 0x1af   : > { %p1032_p4 = scmp.ne.s32.totalorder %s1030_s12, %s1031_s25  ;;  %p1037_p10 = scmp.lt.s32.totalorder %s1035_s16, %s1031_s25 }
 0x1b1   : > { %p1033_p7 = pnand %p1032_p4, %p1158_p5  ;;  %p1038_p11 = por %p1037_p10, %p1036_p9 }
 0x1b3   : > { %p1034_p8 = pneg %p1033_p7 }
 0x1b5   : > { %p1039_p12 = pnand %p1038_p11, %p1034_p8 }
 0x1c6   : > { %v907_v38 = vpop.trf.xlu2 }
 0x1c7   : > { %v911_v39 = vunpack.i.h.bf16 %v907_v38  ;;  %v908_v40 = vunpack.i.l.bf16 %v907_v38 }
 0x1c8   : > { %1042 = shalt.err (!%p1039_p12)
}
 0x1c9   : > { %s1088_s6 = smov 128   ;;  %s1089_s11 = smov 8   ;;  %v581_v41 = vpack.c.bf16 %v911_v39, %v911_v39  ;;  %v565_v42 = vpack.c.bf16 %v908_v40, %v908_v40 }
 0x1ca   : > { %851 = dma.vmem_to_hbm [thread:$0]  (%p1158_p5), %s1243_s14, 256, %s678_s0, %s645_s1, %s1088_s6, %s1088_s6, %s1089_s11  }
 0x1cb   : > { %614 = vst.msk [vmem:[%s1241_s17 + $0x40] sm:$0xf] %vm597_vm11, %v581_v41 }
 0x1cc   : > { %598 = vst.msk [vmem:[%s1241_s17] sm:$0xf] %vm597_vm11, %v565_v42 }
 0x1ce   : > { %v912_v43 = vpop.trf.xlu2 }
 0x1cf   : > { %v916_v44 = vunpack.i.h.bf16 %v912_v43  ;;  %v913_v45 = vunpack.i.l.bf16 %v912_v43 }
 0x1d1   : > { %v582_v46 = vpack.c.bf16 %v916_v44, %v916_v44  ;;  %v566_v47 = vpack.c.bf16 %v913_v45, %v913_v45 }
 0x1d3   : > { %615 = vst.msk [vmem:[%s1241_s17 + $0x44] sm:$0xf] %vm597_vm11, %v582_v46 }
 0x1d4   : > { %599 = vst.msk [vmem:[%s1241_s17 + $0x4] sm:$0xf] %vm597_vm11, %v566_v47 }
 0x1d6   : > { %v917_v48 = vpop.trf.xlu2 }
 0x1d7   : > { %v921_v49 = vunpack.i.h.bf16 %v917_v48  ;;  %v918_v50 = vunpack.i.l.bf16 %v917_v48 }
 0x1d9   : > { %v583_v51 = vpack.c.bf16 %v921_v49, %v921_v49  ;;  %v567_v52 = vpack.c.bf16 %v918_v50, %v918_v50 }
 0x1db   : > { %616 = vst.msk [vmem:[%s1241_s17 + $0x48] sm:$0xf] %vm597_vm11, %v583_v51 }
 0x1dc   : > { %600 = vst.msk [vmem:[%s1241_s17 + $0x8] sm:$0xf] %vm597_vm11, %v567_v52 }
 0x1de   : > { %v922_v53 = vpop.trf.xlu2 }
 0x1df   : > { %v926_v54 = vunpack.i.h.bf16 %v922_v53  ;;  %v923_v55 = vunpack.i.l.bf16 %v922_v53 }
 0x1e1   : > { %v584_v56 = vpack.c.bf16 %v926_v54, %v926_v54  ;;  %v568_v57 = vpack.c.bf16 %v923_v55, %v923_v55 }
 0x1e3   : > { %617 = vst.msk [vmem:[%s1241_s17 + $0x4c] sm:$0xf] %vm597_vm11, %v584_v56 }
 0x1e4   : > { %601 = vst.msk [vmem:[%s1241_s17 + $0xc] sm:$0xf] %vm597_vm11, %v568_v57 }
 0x1e6   : > { %v927_v58 = vpop.trf.xlu2 }
 0x1e7   : > { %v931_v59 = vunpack.i.h.bf16 %v927_v58  ;;  %v928_v60 = vunpack.i.l.bf16 %v927_v58 }
 0x1e9   : > { %v585_v61 = vpack.c.bf16 %v931_v59, %v931_v59  ;;  %v569_v62 = vpack.c.bf16 %v928_v60, %v928_v60 }
 0x1eb   : > { %618 = vst.msk [vmem:[%s1241_s17 + $0x50] sm:$0xf] %vm597_vm11, %v585_v61 }
 0x1ec   : > { %602 = vst.msk [vmem:[%s1241_s17 + $0x10] sm:$0xf] %vm597_vm11, %v569_v62 }
 0x1ee   : > { %v932_v63 = vpop.trf.xlu2 }
 0x1ef   : > { %v936_v0 = vunpack.i.h.bf16 %v932_v63  ;;  %v933_v1 = vunpack.i.l.bf16 %v932_v63 }
 0x1f1   : > { %v586_v2 = vpack.c.bf16 %v936_v0, %v936_v0  ;;  %v570_v3 = vpack.c.bf16 %v933_v1, %v933_v1 }
 0x1f3   : > { %619 = vst.msk [vmem:[%s1241_s17 + $0x54] sm:$0xf] %vm597_vm11, %v586_v2 }
 0x1f4   : > { %603 = vst.msk [vmem:[%s1241_s17 + $0x14] sm:$0xf] %vm597_vm11, %v570_v3 }
 0x1f6   : > { %v937_v4 = vpop.trf.xlu2 }
 0x1f7   : > { %v941_v5 = vunpack.i.h.bf16 %v937_v4  ;;  %v938_v6 = vunpack.i.l.bf16 %v937_v4 }
 0x1f9   : > { %v587_v7 = vpack.c.bf16 %v941_v5, %v941_v5  ;;  %v571_v8 = vpack.c.bf16 %v938_v6, %v938_v6 }
 0x1fb   : > { %620 = vst.msk [vmem:[%s1241_s17 + $0x58] sm:$0xf] %vm597_vm11, %v587_v7 }
 0x1fc   : > { %604 = vst.msk [vmem:[%s1241_s17 + $0x18] sm:$0xf] %vm597_vm11, %v571_v8 }
 0x1fe   : > { %v942_v9 = vpop.trf.xlu2 }
 0x1ff   : > { %v946_v10 = vunpack.i.h.bf16 %v942_v9  ;;  %v943_v11 = vunpack.i.l.bf16 %v942_v9 }
 0x201   : > { %v588_v12 = vpack.c.bf16 %v946_v10, %v946_v10  ;;  %v572_v13 = vpack.c.bf16 %v943_v11, %v943_v11 }
 0x203   : > { %621 = vst.msk [vmem:[%s1241_s17 + $0x5c] sm:$0xf] %vm597_vm11, %v588_v12 }
 0x204   : > { %605 = vst.msk [vmem:[%s1241_s17 + $0x1c] sm:$0xf] %vm597_vm11, %v572_v13 }
 0x206   : > { %v947_v14 = vpop.trf.xlu2 }
 0x207   : > { %v951_v15 = vunpack.i.h.bf16 %v947_v14  ;;  %v948_v16 = vunpack.i.l.bf16 %v947_v14 }
 0x209   : > { %v589_v17 = vpack.c.bf16 %v951_v15, %v951_v15  ;;  %v573_v18 = vpack.c.bf16 %v948_v16, %v948_v16 }
 0x20b   : > { %622 = vst.msk [vmem:[%s1241_s17 + $0x60] sm:$0xf] %vm597_vm11, %v589_v17 }
 0x20c   : > { %606 = vst.msk [vmem:[%s1241_s17 + $0x20] sm:$0xf] %vm597_vm11, %v573_v18 }
 0x20e   : > { %v952_v19 = vpop.trf.xlu2 }
 0x20f   : > { %v956_v22 = vunpack.i.h.bf16 %v952_v19  ;;  %v953_v23 = vunpack.i.l.bf16 %v952_v19 }
 0x211   : > { %v590_v24 = vpack.c.bf16 %v956_v22, %v956_v22  ;;  %v574_v25 = vpack.c.bf16 %v953_v23, %v953_v23 }
 0x213   : > { %623 = vst.msk [vmem:[%s1241_s17 + $0x64] sm:$0xf] %vm597_vm11, %v590_v24 }
 0x214   : > { %607 = vst.msk [vmem:[%s1241_s17 + $0x24] sm:$0xf] %vm597_vm11, %v574_v25 }
 0x216   : > { %v957_v26 = vpop.trf.xlu2 }
 0x217   : > { %v961_v27 = vunpack.i.h.bf16 %v957_v26  ;;  %v958_v28 = vunpack.i.l.bf16 %v957_v26 }
 0x219   : > { %v591_v29 = vpack.c.bf16 %v961_v27, %v961_v27  ;;  %v575_v21 = vpack.c.bf16 %v958_v28, %v958_v28 }
 0x21b   : > { %624 = vst.msk [vmem:[%s1241_s17 + $0x68] sm:$0xf] %vm597_vm11, %v591_v29 }
 0x21c   : > { %608 = vst.msk [vmem:[%s1241_s17 + $0x28] sm:$0xf] %vm597_vm11, %v575_v21 }
 0x21e   : > { %v962_v30 = vpop.trf.xlu2 }
 0x21f   : > { %v966_v31 = vunpack.i.h.bf16 %v962_v30  ;;  %v963_v32 = vunpack.i.l.bf16 %v962_v30 }
 0x221   : > { %v592_v33 = vpack.c.bf16 %v966_v31, %v966_v31  ;;  %v576_v34 = vpack.c.bf16 %v963_v32, %v963_v32 }
 0x223   : > { %625 = vst.msk [vmem:[%s1241_s17 + $0x6c] sm:$0xf] %vm597_vm11, %v592_v33 }
 0x224   : > { %609 = vst.msk [vmem:[%s1241_s17 + $0x2c] sm:$0xf] %vm597_vm11, %v576_v34 }
 0x226   : > { %v967_v35 = vpop.trf.xlu2 }
 0x227   : > { %v971_v36 = vunpack.i.h.bf16 %v967_v35  ;;  %v968_v37 = vunpack.i.l.bf16 %v967_v35 }
 0x229   : > { %v593_v20 = vpack.c.bf16 %v971_v36, %v971_v36  ;;  %v577_v38 = vpack.c.bf16 %v968_v37, %v968_v37 }
 0x22b   : > { %626 = vst.msk [vmem:[%s1241_s17 + $0x70] sm:$0xf] %vm597_vm11, %v593_v20 }
 0x22c   : > { %610 = vst.msk [vmem:[%s1241_s17 + $0x30] sm:$0xf] %vm597_vm11, %v577_v38 }
 0x22e   : > { %v972_v39 = vpop.trf.xlu2 }
 0x22f   : > { %v976_v40 = vunpack.i.h.bf16 %v972_v39  ;;  %v973_v41 = vunpack.i.l.bf16 %v972_v39 }
 0x231   : > { %v594_v42 = vpack.c.bf16 %v976_v40, %v976_v40  ;;  %v578_v43 = vpack.c.bf16 %v973_v41, %v973_v41 }
 0x233   : > { %627 = vst.msk [vmem:[%s1241_s17 + $0x74] sm:$0xf] %vm597_vm11, %v594_v42 }
 0x234   : > { %611 = vst.msk [vmem:[%s1241_s17 + $0x34] sm:$0xf] %vm597_vm11, %v578_v43 }
 0x236   : > { %v977_v44 = vpop.trf.xlu2 }
 0x237   : > { %v981_v45 = vunpack.i.h.bf16 %v977_v44  ;;  %v978_v46 = vunpack.i.l.bf16 %v977_v44 }
 0x239   : > { %v595_v47 = vpack.c.bf16 %v981_v45, %v981_v45  ;;  %v579_v48 = vpack.c.bf16 %v978_v46, %v978_v46 }
 0x23b   : > { %628 = vst.msk [vmem:[%s1241_s17 + $0x78] sm:$0xf] %vm597_vm11, %v595_v47 }
 0x23c   : > { %612 = vst.msk [vmem:[%s1241_s17 + $0x38] sm:$0xf] %vm597_vm11, %v579_v48 }
 0x23e   : > { %v982_v49 = vpop.trf.xlu2 }
 0x23f   : > { %v986_v50 = vunpack.i.h.bf16 %v982_v49  ;;  %v983_v51 = vunpack.i.l.bf16 %v982_v49 }
 0x241   : > { %v596_v52 = vpack.c.bf16 %v986_v50, %v986_v50  ;;  %v580_v53 = vpack.c.bf16 %v983_v51, %v983_v51 }
 0x243   : > { %629 = vst.msk [vmem:[%s1241_s17 + $0x7c] sm:$0xf] %vm597_vm11, %v596_v52 }
 0x244   : > { %613 = vst.msk [vmem:[%s1241_s17 + $0x3c] sm:$0xf] %vm597_vm11, %v580_v53 }
 0x245 PF: > { %p861_p5 = scmp.ge.s32.totalorder %s1081_s21, 2  ;;  %s692_s28 = sand.u32 1, %s1069_s18  }
 0x246   : > { %s693_s14 = scalar_lea.sflag [#allocation3], %s692_s28 }
 0x247   : > { %p855_p13 = pnand %p861_p5, %p1162_p6 }
 0x249   : > { %p856_p0 = pneg %p855_p13 }
 0x24b   : > { %1060 = dma.done.wait (%p856_p0), %s693_s14, 128  }
 0x24c   : > { %1062 = vsyncadd (%p856_p0), %s693_s14, 4294967168  ;;  %s711_s10 = scalar_lea.sflag [#allocation5], %s692_s28 }
 0x24d   : > { %1064 = dma.done.wait (%p856_p0), %s711_s10, 256  }
 0x24e   : > { %1066 = vsyncadd (%p856_p0), %s711_s10, 4294967040  ;;  %p19_p1 = scmp.ge.s32.totalorder %s1145_s24, 4   ;;  %s1369_s18 = smov %s1073_s19 }
 0x24f   : > { %s1370_s19 = smov %s1077_s20  ;;  %s1371_s20 = smov %s1156_s27 }
 0x250   : > { %s1372_s21 = smov %s1145_s24  ;;  %21 = sbr.rel (!%p19_p1) target bundleno = 8 (0x8), region = 96 }
 0x255   :  { %717 = vsyncpa [#allocation3], 1 }
 0x256   :  { %719 = vsyncpa [#allocation3 + $0x1], 1 }
 0x257   :  { %720 = vsyncpa [#allocation5], 1 }
 0x258   :  { %722 = vsyncpa [#allocation5 + $0x1], 1 }

</bundles_post_ra>
